<compile_context>
chip_gen: v6e
topology: v6e:2x2x1
jax: 0.10.0
libtpu: 0.0.40
codegen_flags: <defaults>
</compile_context>

<pallas_src>
import jax
import jax.numpy as jnp
from jax.experimental import pallas as pl
from jax.experimental.pallas import tpu as pltpu


def group_embedding_kernel(x_ref, p_ref, out_ref):
    x = x_ref[...]                                   # (GB, N, E) f32
    GB, N, E = x.shape

    p = p_ref[...]                                   # (E + 3, H) packed params
    w1 = p[:E, :]                                    # (E, H)
    b1 = p[E:E + 1, :]                               # (1, H)
    w2 = p[E + 1:E + 2, :]                           # (1, H)  att_linear2 weight (transposed)
    b2 = p[E + 2:E + 3, 0:1]                         # (1, 1)

    x2 = x.reshape(GB * N, E)                        # collapse groups: one big MXU pass

    # att_linear1 + relu  (MXU, M = GB*N rows)
    h = jnp.dot(x2, w1, preferred_element_type=jnp.float32) + b1
    h = jnp.maximum(h, 0.0)                          # (GB*N, H)

    # TODO(synk): F.dropout is identity in eval mode; training-mode dropout not implemented.

    # att_linear2 + relu as a VPU multiply + lane reduce (avoids a 1-output-lane MXU pass)
    s = jnp.sum(h * w2, axis=-1, keepdims=True) + b2
    s = jnp.maximum(s, 0.0)                          # (GB*N, 1)

    # Padding mask from column 0 of each member embedding (same rule as PyTorch code;
    # a genuine member whose first coordinate is exactly 0.0 is treated as padding).
    mask = (x2[:, 0:1] != 0.0).astype(jnp.float32)
    s = s * mask

    # Per-group softmax over the member axis, kept 2-D (groups on sublanes, members
    # on lanes) so the max/exp/sum chain isn't run at 1/128 lane occupancy.
    s2 = s.reshape(GB, N)
    m = jnp.max(s2, axis=-1, keepdims=True)
    e = jnp.exp(s2 - m)
    denom = jnp.sum(e, axis=-1, keepdims=True)
    att = e * pl.reciprocal(denom, approx=True)      # (GB, N)

    # user_p[g] = members_embed[g].T @ att[g] == sum_n att[g, n] * x[g, n]
    out_ref[...] = jnp.sum(att.reshape(GB, N, 1) * x, axis=1)   # (GB, E)


def _pick_groups_per_block(B, N, E, groups_per_block):
    """Choose the per-grid-step group count GB (multiple of 8, VMEM-aware)."""
    if B < 8:
        return B                                     # block equals the full batch dim
    # Double-buffered x block + out block must sit comfortably inside the smallest
    # default scoped VMEM (v5e: 16 MiB; v7x: 32 MiB).  Budget ~8 MiB, leave headroom.
    bytes_per_group = 4 * (N * E + E)
    gb_vmem = max(8, (8 * 1024 * 1024) // (2 * bytes_per_group))
    gb = min(int(groups_per_block), gb_vmem, B)
    if gb >= B and B >= 16:
        gb = B // 2                                  # keep >= 2 grid steps (pipeline / 2 TCs)
    gb = max(8, (gb // 8) * 8)                       # sublane-aligned output block
    return min(gb, B)


def group_embedding_forward(members_embed, w1, b1, w2, b2, *, groups_per_block=1024):
    """members_embed: (B, N, E) batched groups, or (N, E) single group (PyTorch API).
    Returns (B, E) for batched input, (1, E) for a single group."""
    x = members_embed
    if x.ndim == 2:
        x = x[None]                                  # single group -> batch of 1
    if x.dtype != jnp.float32:
        x = x.astype(jnp.float32)
    B, N, E = x.shape
    H = w1.shape[1]

    GB = _pick_groups_per_block(B, N, E, groups_per_block)
    grid = pl.cdiv(B, GB)                            # uneven last block: OOB out rows dropped

    # Pack {w1, b1, w2^T, b2} into one parameter block -> single VMEM-resident DMA.
    params = jnp.zeros((E + 3, H), jnp.float32)
    params = params.at[:E, :].set(w1.astype(jnp.float32))
    params = params.at[E, :].set(b1.reshape(-1).astype(jnp.float32))
    params = params.at[E + 1, :].set(w2.reshape(-1).astype(jnp.float32))
    params = params.at[E + 2, 0].set(b2.reshape(()).astype(jnp.float32))

    cost = pl.CostEstimate(
        flops=int(2 * B * N * (E * H + H + E)),
        transcendentals=int(B * N),
        bytes_accessed=int(4 * (B * N * E + B * E + (E + 3) * H)),
    )

    out = pl.pallas_call(
        group_embedding_kernel,
        out_shape=jax.ShapeDtypeStruct((B, E), jnp.float32),
        grid=(grid,),
        in_specs=[
            pl.BlockSpec((GB, N, E), lambda i: (i, 0, 0)),     # x advances per step
            pl.BlockSpec((E + 3, H), lambda i: (0, 0)),        # params stay resident
        ],
        out_specs=pl.BlockSpec((GB, E), lambda i: (i, 0)),
        compiler_params=pltpu.CompilerParams(
            dimension_semantics=("parallel",)),
        cost_estimate=cost,
    )(x, params)
    return out                                       # (B, E); (1, E) if input was a single group


def reference_forward_single(x, w1, b1, w2, b2):
    h = jax.nn.relu(x @ w1 + b1)
    s = jax.nn.relu(jnp.dot(h, w2, precision=jax.lax.Precision.HIGHEST) + b2)
    mask = (x[:, 0:1] != 0.0).astype(jnp.float32)
    s = s * mask
    att = jax.nn.softmax(s, axis=0)
    return (x.T @ att).T                             # (1, E)


if __name__ == "__main__":
    key = jax.random.PRNGKey(0)
    k_x, k_w1, k_b1, k_w2, k_b2 = jax.random.split(key, 5)

    B = 20           # number of groups (deliberately not a multiple of 8 -> partial last block)
    N = 8            # members per group
    E = 32           # embedding_dims
    H = 16           # hidden size of att_linear1

    x = jax.random.normal(k_x, (B, N, E), dtype=jnp.float32)
    # zero out the last two member rows of every group to exercise the padding mask
    x = x.at[:, N - 2:, :].set(0.0)

    # Linear weights stored as (in_features, out_features)
    w1 = jax.random.normal(k_w1, (E, H), dtype=jnp.float32) * 0.1
    b1 = jax.random.normal(k_b1, (1, H), dtype=jnp.float32) * 0.1
    w2 = jax.random.normal(k_w2, (H, 1), dtype=jnp.float32) * 0.1
    b2 = jax.random.normal(k_b2, (1, 1), dtype=jnp.float32) * 0.1

    # Batched path: GB=8 -> grid of 3 steps, last one partial (tests masked writeback).
    out = group_embedding_forward(x, w1, b1, w2, b2)
    out = jax.block_until_ready(out)

    ref = jax.vmap(lambda xg: reference_forward_single(xg, w1, b1, w2, b2))(x)[:, 0, :]
    assert out.shape == (B, E)
    # tolerance allows for the approx EUP reciprocal in the softmax denominator
    assert jnp.allclose(out, ref, atol=2e-3, rtol=2e-3)

    # Single-group path (original PyTorch module signature): (N, E) -> (1, E).
    out1 = group_embedding_forward(x[0], w1, b1, w2, b2)
    out1 = jax.block_until_ready(out1)
    ref1 = reference_forward_single(x[0], w1, b1, w2, b2)
    assert out1.shape == (1, E)
    assert jnp.allclose(out1, ref1, atol=2e-3, rtol=2e-3)

    print("KERNEL_OK")
</pallas_src>

<mosaic_0001>
module attributes {stable_mosaic.version = 11 : i64} {
  func.func @group_embedding_kernel(%arg0: i32, %arg1: memref<8x8x32xf32, #tpu.memory_space<vmem>>, %arg2: memref<35x16xf32, #tpu.memory_space<vmem>>, %arg3: memref<8x32xf32, #tpu.memory_space<vmem>>) attributes {dimension_semantics = [#tpu.dimension_semantics<parallel>], iteration_bounds = array<i64: 3>, scalar_prefetch = 0 : i64, scratch_operands = 0 : i64, tpu.core_type = #tpu.core_type<tc>, window_params = [{transform_indices = @transform_0, window_bounds = array<i64: 8, 8, 32>}, {pipeline_mode = #tpu.pipeline_mode<synchronous>, transform_indices = @transform_1, window_bounds = array<i64: 35, 16>}, {transform_indices = @transform_2, window_bounds = array<i64: 8, 32>}]} {
    %c0 = arith.constant 0 : index
    %c0_0 = arith.constant 0 : index
    %c0_1 = arith.constant 0 : index
    %0 = vector.load %arg1[%c0, %c0_0, %c0_1] : memref<8x8x32xf32, #tpu.memory_space<vmem>>, vector<8x8x32xf32>
    %c0_2 = arith.constant 0 : index
    %c0_3 = arith.constant 0 : index
    %1 = vector.load %arg2[%c0_2, %c0_3] : memref<35x16xf32, #tpu.memory_space<vmem>>, vector<35x16xf32>
    %2 = vector.extract_strided_slice %1 {offsets = [0, 0], sizes = [32, 16], strides = [1, 1]} : vector<35x16xf32> to vector<32x16xf32>
    %3 = vector.extract_strided_slice %1 {offsets = [32, 0], sizes = [1, 16], strides = [1, 1]} : vector<35x16xf32> to vector<1x16xf32>
    %4 = vector.extract_strided_slice %1 {offsets = [33, 0], sizes = [1, 16], strides = [1, 1]} : vector<35x16xf32> to vector<1x16xf32>
    %5 = vector.extract_strided_slice %1 {offsets = [34, 0], sizes = [1, 1], strides = [1, 1]} : vector<35x16xf32> to vector<1x1xf32>
    %6 = vector.shape_cast %0 : vector<8x8x32xf32> to vector<64x32xf32>
    %cst = arith.constant dense<0.000000e+00> : vector<64x16xf32>
    %7 = tpu.matmul %6, %2, %cst {dimension_numbers = #tpu.dot_dimension_numbers<[1], [0], [0], [1], [0, 0, 1, 1], [], []>} : vector<64x32xf32>, vector<32x16xf32>, vector<64x16xf32> -> vector<64x16xf32>
    %8 = vector.broadcast %3 : vector<1x16xf32> to vector<64x16xf32>
    %9 = arith.addf %7, %8 : vector<64x16xf32>
    %cst_4 = arith.constant 0.000000e+00 : f32
    %10 = vector.broadcast %cst_4 : f32 to vector<64x16xf32>
    %11 = arith.maximumf %9, %10 : vector<64x16xf32>
    %12 = vector.broadcast %4 : vector<1x16xf32> to vector<64x16xf32>
    %13 = arith.mulf %11, %12 : vector<64x16xf32>
    %cst_5 = arith.constant dense<0.000000e+00> : vector<64xf32>
    %14 = vector.multi_reduction <add>, %13, %cst_5 [1] : vector<64x16xf32> to vector<64xf32>
    %15 = vector.shape_cast %14 : vector<64xf32> to vector<64x1xf32>
    %16 = vector.broadcast %5 : vector<1x1xf32> to vector<64x1xf32>
    %17 = arith.addf %15, %16 : vector<64x1xf32>
    %cst_6 = arith.constant 0.000000e+00 : f32
    %18 = vector.broadcast %cst_6 : f32 to vector<64x1xf32>
    %19 = arith.maximumf %17, %18 : vector<64x1xf32>
    %20 = vector.extract_strided_slice %6 {offsets = [0, 0], sizes = [64, 1], strides = [1, 1]} : vector<64x32xf32> to vector<64x1xf32>
    %cst_7 = arith.constant 0.000000e+00 : f32
    %21 = vector.broadcast %cst_7 : f32 to vector<64x1xf32>
    %22 = arith.cmpf one, %20, %21 : vector<64x1xf32>
    %23 = arith.extui %22 : vector<64x1xi1> to vector<64x1xi32>
    %24 = arith.sitofp %23 : vector<64x1xi32> to vector<64x1xf32>
    %25 = arith.mulf %19, %24 : vector<64x1xf32>
    %26 = vector.shape_cast %25 : vector<64x1xf32> to vector<8x8xf32>
    %cst_8 = arith.constant dense<0xFF800000> : vector<8xf32>
    %27 = vector.multi_reduction <maximumf>, %26, %cst_8 [1] : vector<8x8xf32> to vector<8xf32>
    %28 = vector.shape_cast %27 : vector<8xf32> to vector<8x1xf32>
    %29 = vector.broadcast %28 : vector<8x1xf32> to vector<8x8xf32>
    %30 = arith.subf %26, %29 : vector<8x8xf32>
    %31 = math.exp %30 : vector<8x8xf32>
    %cst_9 = arith.constant dense<0.000000e+00> : vector<8xf32>
    %32 = vector.multi_reduction <add>, %31, %cst_9 [1] : vector<8x8xf32> to vector<8xf32>
    %33 = vector.shape_cast %32 : vector<8xf32> to vector<8x1xf32>
    %34 = tpu.reciprocal %33 {approx = true} : vector<8x1xf32> -> vector<8x1xf32>
    %35 = vector.broadcast %34 : vector<8x1xf32> to vector<8x8xf32>
    %36 = arith.mulf %31, %35 : vector<8x8xf32>
    %37 = vector.shape_cast %36 : vector<8x8xf32> to vector<8x8x1xf32>
    %38 = vector.broadcast %37 : vector<8x8x1xf32> to vector<8x8x32xf32>
    %39 = arith.mulf %38, %0 : vector<8x8x32xf32>
    %cst_10 = arith.constant dense<0.000000e+00> : vector<8x32xf32>
    %40 = vector.multi_reduction <add>, %39, %cst_10 [1] : vector<8x8x32xf32> to vector<8x32xf32>
    %c0_11 = arith.constant 0 : index
    %c0_12 = arith.constant 0 : index
    %41 = vector.load %arg3[%c0_11, %c0_12] : memref<8x32xf32, #tpu.memory_space<vmem>>, vector<8x32xf32>
    tpu.vector_store %arg3[%c0_11, %c0_12], %40 {strides = array<i32>} : memref<8x32xf32, #tpu.memory_space<vmem>>, vector<8x32xf32>,
    return
  }
  func.func @transform_0(%arg0: i32) -> (i32, i32, i32) {
    %c0_i32 = arith.constant 0 : i32
    %c0_i32_0 = arith.constant 0 : i32
    %c0_i32_1 = arith.constant 0 : i32
    return %arg0, %c0_i32, %c0_i32_0 : i32, i32, i32
  }
  func.func @transform_1(%arg0: i32) -> (i32, i32) {
    %c0_i32 = arith.constant 0 : i32
    %c0_i32_0 = arith.constant 0 : i32
    %c0_i32_1 = arith.constant 0 : i32
    return %c0_i32, %c0_i32_0 : i32, i32
  }
  func.func @transform_2(%arg0: i32) -> (i32, i32) {
    %c0_i32 = arith.constant 0 : i32
    %c0_i32_0 = arith.constant 0 : i32
    return %arg0, %c0_i32 : i32, i32
  }
}

</mosaic_0001>

<bundles_post_ra>
// kernel: tpu_custom_call.1
= control target key start
LH: loop header
LB: loop body
LE: loop exit
PB: predicated region body
PF: predicated region fallthrough
CT: control target
= control target key end

     0   :  { %7 = vsyncpa [#allocation3], 0  ;;  %s1501_s0 = inlined_call_operand.hbm [shape: f32[20,8,32], index: 0, kind: input, shape index: {}]   ;;  %s1502_s1 = inlined_call_operand.vmem [shape: f32[35,16], index: 1, kind: input, shape index: {}]   ;;  %s1503_s2 = inlined_call_operand.hbm [shape: f32[20,32], index: 2, kind: output, shape index: {}]  }
   0x1   :  { %9 = vsyncpa [#allocation3 + $0x1], 0 }
   0x2   :  { %10 = vsyncpa [#allocation4], 0 }
   0x3   :  { %12 = vsyncpa [#allocation4 + $0x1], 0  ;;  %s1148_s9 = smov 0   ;;  %s1150_s10 = smov 0  }
   0x4   :  { %s1152_s11 = smov 0   ;;  %s1154_s12 = smov 0  }
   0x5 LB: > { %s1169_s13 = sadd.s32 4294967295, %s1125_s12   ;;  %s897_s14 = sadd.s32 4294967294, %s1125_s12   ;;  %s1125_s12 = sphi %s1154_s12, %s1511_s12   ;;  %s1121_s11 = sphi %s1152_s11, %s1510_s11   ;;  %s1117_s10 = sphi %s1150_s10, %s1509_s10   ;;  %s1113_s9 = sphi %s1148_s9, %s1508_s9  }
   0x6   : > { %s1173_s15 = sadd.s32 1, %s1125_s12   ;;  %s25_s16 = sadd.s32 1, %s1121_s11 }
   0x7   : > { %s22_s17 = ssub.s32 %s1125_s12, %s1173_s15  ;;  %p32_p0 = scmp.ne.s32.totalorder %s1121_s11, %s1117_s10 }
   0x8   : > { %p23_p1 = scmp.eq.s32.totalorder %s22_s17, 0  ;;  %p33_p2 = scmp.eq.s32.totalorder %s1125_s12, 0 }
   0x9   : > { %p38_p3 = scmp.ne.s32.totalorder %s1117_s10, %s1113_s9  ;;  %p39_p4 = scmp.eq.s32.totalorder %s1169_s13, 0 }
   0xa   : > { %s1185_s18 = scalar_select %p23_p1, %s1121_s11, %s25_s16  }
   0xb   : > { %p34_p5 = por %p33_p2, %p32_p0  ;;  %p1187_p6 = por %p39_p4, %p38_p3 }
   0xc   : > { %p83_p7 = scmp.eq.s32.totalorder %s1169_s13, 2  ;;  %p89_p8 = scmp.eq.s32.totalorder %s897_s14, 2 }
   0xd   : > { %p899_p11 = scmp.ge.s32.totalorder %s1125_s12, 3 }
   0xe   : > { %p1192_p9 = por %p83_p7, %p32_p0  ;;  %p1196_p10 = por %p89_p8, %p38_p3 }
   0xf   : > { %108 = sbr.rel (%p899_p11) target bundleno = 52 (0x34), region = 20 }
  0x10   : > { %s1506_s21 = scalar_select %p1196_p10, 1, 0 }
  0x14   : > { %111 = sbr.rel (!%p34_p5) target bundleno = 52 (0x34), region = 24  ;;  %s112_s22 = sand.u32 (%p34_p5), 1, %s1121_s11  }
  0x15   : > { %s901_s23 = sshll.u32 (%p34_p5), %s1125_s12, 3  ;;  %s900_s24 = sshll.u32 (%p34_p5), %s112_s22, 6 }
  0x16   : > { %s118_s25 = ssub.s32 (%p34_p5), 20, %s901_s23  ;;  %s1206_s28 = scalar_lea.sflag (%p34_p5), [#allocation3], %s112_s22 }
  0x17   : > { %p119_p12 = scmp.lt.s32.totalorder (%p34_p5), %s118_s25, 8  ;;  %s116_s29 = scalar_lea.vmem (%p34_p5), [#allocation2], %s900_s24 }
  0x19   : > { %s1513_s25 = smov (!%p119_p12, %s118_s25), 8 }
  0x1a   : > { %s1203_s26 = sshll.u32 %s1513_s25, 7 }
  0x1b   : > { %s123_s27 = ssub.s32 1024, %s1203_s26 }
  0x1c   : > { %124 = vsyncadd %s1206_s28, %s123_s27  ;;  %p903_p13 = scmp.ne.s32.totalorder %s1203_s26, 0  ;;  %s930_s30 = sshll.u32 %s1125_s12, 10 }
  0x1d   : > { %s1214_s5 = scalar_lea.hbm %s1501_s0, %s930_s30  ;;  %s129_s6 = sshll.u32 %s116_s29, 4  ;;  %s1216_s6 = int_to_ptr.vmem [resolvable:$true] %s129_s6 }
  0x1e   : > { %s1035_s7 = scalar_lea.hbm %s1214_s5, %s1203_s26  ;;  %s1039_s16 = scalar_lea.hbm %s1501_s0, 2560 }
  0x1f   : > { %p1036_p0 = scmp.ne.s32.totalorder %s1214_s5, %s1035_s7  ;;  %p1040_p3 = scmp.lt.s32.totalorder %s1214_s5, %s1501_s0 }
  0x20   : > { %p1041_p4 = scmp.lt.s32.totalorder %s1039_s16, %s1035_s7 }
  0x21   : > { %p1037_p1 = pnand %p1036_p0, %p903_p13 }
  0x22   : > { %p1042_p5 = por %p1041_p4, %p1040_p3 }
  0x23   : > { %p1038_p2 = pneg %p1037_p1 }
  0x25   : > { %p1043_p7 = pnand %p1042_p5, %p1038_p2 }
  0x27   : > { %1046 = shalt.err (!%p1043_p7)
}
  0x28   : > { %s1047_s23 = scalar_lea.vmem %s1216_s6, %s1203_s26  ;;  %s1127_s24 = smov [#allocation2]  }
  0x29   : > { %p1048_p8 = scmp.ne.s32.totalorder %s1216_s6, %s1047_s23  ;;  %s1051_s25 = sshll.u32 %s1127_s24, 4  ;;  %s1052_s25 = int_to_ptr.vmem [resolvable:$false] %s1051_s25 }
  0x2a   : > { %s1053_s27 = scalar_lea.vmem %s1052_s25, 2048  ;;  %p1054_p0 = scmp.lt.s32.totalorder %s1216_s6, %s1052_s25 }
  0x2b   : > { %p1049_p11 = pnand %p1048_p8, %p903_p13  ;;  %p1055_p1 = scmp.lt.s32.totalorder %s1053_s27, %s1047_s23 }
  0x2d   : > { %p1050_p12 = pneg %p1049_p11  ;;  %p1056_p10 = por %p1055_p1, %p1054_p0 }
  0x2f   : > { %p1057_p3 = pnand %p1056_p10, %p1050_p12 }
  0x31   : > { %1060 = shalt.err (!%p1057_p3)
}
  0x32   : > { %s1128_s29 = smov 128   ;;  %s1129_s30 = smov 8  }
  0x33   : > { %135 = dma.hbm_to_vmem [thread:$0]  (%p903_p13), %s1214_s5, %s1203_s26, %s1216_s6, %s1206_s28, %s1128_s29, %s1128_s29, %s1129_s30  }
  0x34 PF: > { %p907_p2 = scmp.ge.s32.totalorder %s1125_s12, 1  ;;  %p137_p4 = scmp.lt.s32.totalorder %s1125_s12, 4 }
  0x36   : > { %p138_p5 = pnand %p907_p2, %p137_p4 }
  0x37   : > { %s1245_s3 = sand.u32 (!%p138_p5), 1, %s1117_s10  }
  0x38   : > { %141 = sbr.rel (%p138_p5) target bundleno = 1222 (0x4c6), region = 28  ;;  %s908_s4 = sshll.u32 (!%p138_p5), %s1245_s3, 6 }
  0x39   : > { %s144_s7 = scalar_lea.sflag (!%p138_p5), [#allocation3], %s1245_s3  ;;  %s1249_s8 = scalar_lea.vmem (!%p138_p5), [#allocation2], %s908_s4 }
  0x3d   : > { %1104 = dma.done.wait (%p1187_p6), %s144_s7, 1024  }
  0x3e   : > { %1106 = vsyncadd (%p1187_p6), %s144_s7, 4294966272  ;;  %vm190_vm0 = vcmask 261120   ;;  %v184_v0 = vld [vmem:[%s1502_s1 + $0x18] sm:$0xff]  ;;  %v183_v1 = vld [vmem:[%s1502_s1 + $0x10] sm:$0xff]  ;;  %v186_v12 = vlaneseq  ;;  %vm340_vm1 = vcmask 130048   ;;  %v1130_v59 = vmov 0  }
  0x3f   : > { %943 = vmatprep.subr.mxu0 %v184_v0  ;;  %v1262_v2 = vld [vmem:[%s1249_s8] sm:$0xff]  ;;  %963 = vmatprep.subr.mxu1 %v184_v0  ;;  %v182_v3 = vld [vmem:[%s1502_s1 + $0x8] sm:$0xff]  ;;  %v1276_v6 = vld [vmem:[%s1249_s8 + $0x10] sm:$0xff]  ;;  %vm483_vm10 = vcmask 1041409   ;;  %vm485_vm11 = vcmask 1042434   ;;  %vm487_vm12 = vcmask 1043459  }
  0x40   : > { %944 = vmatpush3.msra.mxu0 %v184_v0  ;;  %951 = vmatprep.mubr.msk.f32.mxu0 %vm190_vm0, %v1262_v2  ;;  %v181_v4 = vld [vmem:[%s1502_s1] sm:$0xff]  ;;  %v1273_v5 = vld [vmem:[%s1249_s8 + $0x8] sm:$0xff]  ;;  %v1287_v9 = vld [vmem:[%s1249_s8 + $0x30] sm:$0xff]  ;;  %v1308_v13 = vshrl.u32 %v186_v12, 7  ;;  %vm385_vm3 = vcmp.ne.f32.partialorder %v1262_v2, 0.0  ;;  %vm387_vm7 = vcmp.ne.f32.partialorder %v1276_v6, 0.0 }
  0x41   : > { %945 = vmatprep.subr.mxu0 %v183_v1  ;;  %967 = vmatpush3.msra.mxu1 %v184_v0  ;;  %v1279_v7 = vld [vmem:[%s1249_s8 + $0x20] sm:$0xff]  ;;  %v1282_v8 = vld [vmem:[%s1249_s8 + $0x28] sm:$0xff]  ;;  %v1292_v10 = vld [vmem:[%s1249_s8 + $0x18] sm:$0xff]  ;;  %vm386_vm2 = vcmp.ne.f32.partialorder %v1273_v5, 0.0  ;;  %v1131_v0 = vmov 0.0   ;;  %vm391_vm8 = vcmp.ne.f32.partialorder %v1287_v9, 0.0 }
  0x42   : > { %946 = vmatpush3.msra.mxu0 %v183_v1  ;;  %964 = vmatprep.subr.mxu1 %v183_v1  ;;  %v1301_v11 = vld [vmem:[%s1249_s8 + $0x38] sm:$0xff]  ;;  %v1311_v14 = vsub.s32 0, %v1308_v13  ;;  %v185_v15 = vld [vmem:[%s1502_s1 + $0x20] sm:$0x7]  ;;  %v1318_v17 = vsub.s32 1, %v1308_v13  ;;  %v1330_v60 = vsub.s32 2, %v1308_v13 }
  0x43   : > { %947 = vmatprep.subr.mxu0 %v182_v3  ;;  %968 = vmatpush3.msra.mxu1 %v183_v1  ;;  %v919_v1 = vsel %vm386_vm2, 1.0, %v1131_v0  ;;  %vm390_vm4 = vcmp.ne.f32.partialorder %v1282_v8, 0.0  ;;  %vm389_vm5 = vcmp.ne.f32.partialorder %v1279_v7, 0.0  ;;  %vm388_vm6 = vcmp.ne.f32.partialorder %v1292_v10, 0.0  ;;  %s909_s24 = sshll.u32 %s1245_s3, 3  ;;  %s927_s25 = sshll.u32 %s1169_s13, 7 }
  0x44   : > { %948 = vmatpush3.msra.mxu0 %v182_v3  ;;  %965 = vmatprep.subr.mxu1 %v182_v3  ;;  %v189_v16 = vrot.slane %v185_v15, %v1311_v14  ;;  %v331_v20 = vrot.slane %v185_v15, %v1318_v17  ;;  %v368_v61 = vrot.slane %v185_v15, %v1330_v60  ;;  %vm392_vm9 = vcmp.ne.f32.partialorder %v1301_v11, 0.0  ;;  %s167_s27 = scalar_lea.vmem [#allocation5], %s909_s24  ;;  %s1463_s7 = scalar_lea.hbm %s1503_s2, %s927_s25 }
  0x45   : > { %949 = vmatprep.subr.mxu0 %v181_v4  ;;  %969 = vmatpush3.msra.mxu1 %v182_v3  ;;  %vm489_vm13 = vcmask 1044484   ;;  %vm491_vm14 = vcmask 1045509   ;;  %vm493_vm15 = vcmask 1046534   ;;  %vm498_vm2 = vcmask 64512   ;;  %s827_s29 = sshll.u32 %s167_s27, 4  ;;  %s814_s8 = scalar_lea.sflag [#allocation4], %s1245_s3  ;;  %s828_s29 = int_to_ptr.vmem [resolvable:$true] %s827_s29 }
  0x46   : > { %950 = vmatpush3.msra.mxu0 %v181_v4  ;;  %966 = vmatprep.subr.mxu1 %v181_v4  ;;  %s1061_s26 = scalar_lea.vmem %s828_s29, 128  ;;  %s1132_s13 = smov [#allocation5]  }
  0x47   : > { %952 = vmatmul.mubr.msk.f32.vlgmr.msra.gmra.mxu0 %vm190_vm0, %v1273_v5  ;;  %970 = vmatpush3.msra.mxu1 %v181_v4  ;;  %p1062_p6 = scmp.ne.s32.totalorder %s828_s29, %s1061_s26  ;;  %s1065_s28 = sshll.u32 %s1132_s13, 4  ;;  %s1066_s28 = int_to_ptr.vmem [resolvable:$false] %s1065_s28 }
  0x48   : > { %954 = vmatprep.mubr.msk.f32.mxu0 %vm190_vm0, %v1276_v6  ;;  %957 = vmatprep.mubr.msk.f32.mxu1 %vm190_vm0, %v1279_v7  ;;  %s1067_s5 = scalar_lea.vmem %s1066_s28, 256  ;;  %p1068_p7 = scmp.lt.s32.totalorder %s828_s29, %s1066_s28 }
  0x49   : > { %958 = vmatmul.mubr.msk.f32.vlgmr.msra.gmra.mxu1 %vm190_vm0, %v1282_v8  ;;  %1016 = vset.pattern.permute.xlu1 %v1130_v59  ;;  %p1063_p10 = pnand %p1062_p6, %p1192_p9  ;;  %p1069_p8 = scmp.lt.s32.totalorder %s1067_s5, %s1061_s26 }
  0x4a   : > { %960 = vmatprep.mubr.msk.f32.mxu1 %vm190_vm0, %v1287_v9  ;;  %1015 = vset.pattern.permute.xlu0 %v1130_v59 }
  0x4b   : > { %955 = vmatmul.mubr.msk.f32.gmra.mxu0 %vm190_vm0, %v1292_v10  ;;  %p1064_p13 = pneg %p1063_p10  ;;  %p1070_p11 = por %p1069_p8, %p1068_p7 }
  0x4d   : > { %961 = vmatmul.mubr.msk.f32.gmra.mxu1 %vm190_vm0, %v1301_v11  ;;  %p1071_p12 = pnand %p1070_p11, %p1064_p13 }
 0x107   : > { %v953_v18 = vpop.f32.mrf.mxu0 }
 0x108   : > { %v287_v19 = vadd.f32 %v953_v18, %v189_v16 }
 0x109   : > { %v281_v21 = vpop.f32.mrf.mxu0  ;;  %v959_v22 = vpop.f32.mrf.mxu1 }
 0x10a   : > { %v321_v23 = vmax.f32 %v287_v19, 0.0  ;;  %v282_v24 = vadd.f32 %v281_v21, %v189_v16  ;;  %v307_v26 = vadd.f32 %v959_v22, %v189_v16 }
 0x10b   : > { %v956_v25 = vpop.f32.mrf.mxu0  ;;  %v301_v27 = vpop.f32.mrf.mxu1 }
 0x10c   : > { %v320_v28 = vmax.f32 %v282_v24, 0.0  ;;  %v297_v29 = vadd.f32 %v956_v25, %v189_v16  ;;  %v333_v30 = vmul.f32 %v331_v20, %v321_v23  ;;  %v302_v32 = vadd.f32 %v301_v27, %v189_v16 }
 0x10d   : > { %v291_v31 = vpop.f32.mrf.mxu0  ;;  %v962_v33 = vpop.f32.mrf.mxu1  ;;  %v325_v38 = vmax.f32 %v307_v26, 0.0  ;;  %v923_v27 = vsel %vm390_vm4, 1.0, %v1131_v0 }
 0x10e   : > { %v323_v34 = vmax.f32 %v297_v29, 0.0  ;;  %v292_v35 = vadd.f32 %v291_v31, %v189_v16  ;;  %v344_v36 = vsel %vm340_vm1, %v333_v30, 0.0  ;;  %v332_v37 = vmul.f32 %v331_v20, %v320_v28 }
 0x10f   : > { %345 = vadd.xlane.f32.xlu0 %v344_v36  ;;  %v324_v39 = vmax.f32 %v302_v32, 0.0  ;;  %v311_v40 = vpop.f32.mrf.mxu1  ;;  %v317_v43 = vadd.f32 %v962_v33, %v189_v16  ;;  %v337_v50 = vmul.f32 %v331_v20, %v325_v38  ;;  %v922_v32 = vsel %vm389_vm5, 1.0, %v1131_v0 }
 0x110   : > { %v322_v41 = vmax.f32 %v292_v35, 0.0  ;;  %v335_v42 = vmul.f32 %v331_v20, %v323_v34  ;;  %v312_v44 = vadd.f32 %v311_v40, %v189_v16  ;;  %v341_v47 = vsel %vm340_vm1, %v332_v37, 0.0 }
 0x111   : > { %v336_v45 = vmul.f32 %v331_v20, %v324_v39  ;;  %v327_v52 = vmax.f32 %v317_v43, 0.0  ;;  %v356_v55 = vsel %vm340_vm1, %v337_v50, 0.0  ;;  %v921_v36 = vsel %vm388_vm6, 1.0, %v1131_v0 }
 0x112   : > { %v350_v46 = vsel %vm340_vm1, %v335_v42, 0.0  ;;  %v334_v48 = vmul.f32 %v331_v20, %v322_v41  ;;  %v326_v49 = vmax.f32 %v312_v44, 0.0  ;;  %v920_v41 = vsel %vm387_vm7, 1.0, %v1131_v0 }
 0x113   : > { %351 = vadd.xlane.f32.xlu1 %v350_v46  ;;  %342 = vadd.xlane.f32.xlu0 %v341_v47  ;;  %v353_v51 = vsel %vm340_vm1, %v336_v45, 0.0  ;;  %v339_v56 = vmul.f32 %v331_v20, %v327_v52  ;;  %v924_v46 = vsel %vm391_vm8, 1.0, %v1131_v0 }
 0x114   : > { %v338_v53 = vmul.f32 %v331_v20, %v326_v49  ;;  %v347_v54 = vsel %vm340_vm1, %v334_v48, 0.0  ;;  %v918_v20 = vsel %vm385_vm3, 1.0, %v1131_v0  ;;  %v925_v49 = vsel %vm392_vm9, 1.0, %v1131_v0 }
 0x115   : > { %v362_v58 = vsel %vm340_vm1, %v339_v56, 0.0 }
 0x116   : > { %v359_v57 = vsel %vm340_vm1, %v338_v53, 0.0  ;;  %v450_v53 = vand.u32 127, %v186_v12  ;;  %vm495_vm1 = vcmask 1047559  }
 0x117   : > { %348 = vadd.xlane.f32.xlu1 %v347_v54  ;;  %354 = vadd.xlane.f32.xlu0 %v353_v51 }
 0x118   : > { %v1364_v56 = vsub.s32 %v450_v53, %v1308_v13 }
 0x11b   : > { %357 = vadd.xlane.f32.xlu1 %v356_v55  ;;  %360 = vadd.xlane.f32.xlu0 %v359_v57 }
 0x11f   : > { %363 = vadd.xlane.f32.xlu1 %v362_v58 }
 0x198   : > { %v346_v62 = vpop.xlane.xlu0 %345 }
 0x199   : > { %v370_v63 = vadd.f32 %v368_v61, %v346_v62 }
 0x19b   : > { %v378_v3 = vmax.f32 %v370_v63, 0.0 }
 0x19c   : > { %v352_v4 = vpop.xlane.xlu1 %351  ;;  %v343_v16 = vpop.xlane.xlu0 %342 }
 0x19d   : > { %v1335_v18 = vmul.f32 %v919_v1, %v378_v3  ;;  %v369_v19 = vadd.f32 %v368_v61, %v343_v16  ;;  %v372_v29 = vadd.f32 %v368_v61, %v352_v4 }
 0x19f   : > { %v377_v21 = vmax.f32 %v369_v19, 0.0  ;;  %429 = vperm.xlu1 %1016, %v1335_v18   ;;  %v380_v33 = vmax.f32 %v372_v29, 0.0 }
 0x1a0   : > { %v349_v22 = vpop.xlane.xlu1 %348  ;;  %v355_v23 = vpop.xlane.xlu0 %354 }
 0x1a1   : > { %v1338_v15 = vmul.f32 %v918_v20, %v377_v21  ;;  %v373_v26 = vadd.f32 %v368_v61, %v355_v23  ;;  %v371_v34 = vadd.f32 %v368_v61, %v349_v22  ;;  %v1351_v38 = vmul.f32 %v921_v36, %v380_v33 }
 0x1a3   : > { %426 = vperm.xlu0 %1015, %v1338_v15   ;;  %v381_v31 = vmax.f32 %v373_v26, 0.0  ;;  %v379_v39 = vmax.f32 %v371_v34, 0.0 }
 0x1a4   : > { %v358_v24 = vpop.xlane.xlu1 %357  ;;  %v361_v37 = vpop.xlane.xlu0 %360 }
 0x1a5   : > { %v374_v25 = vadd.f32 %v368_v61, %v358_v24  ;;  %v1347_v35 = vmul.f32 %v922_v32, %v381_v31  ;;  %v375_v40 = vadd.f32 %v368_v61, %v361_v37  ;;  %v411_v43 = vmul.f32 %v920_v41, %v379_v39 }
 0x1a6   : > { %v517_v31 = vsub.s32 3, %v1308_v13  ;;  %v521_v37 = vsub.s32 4, %v1308_v13 }
 0x1a7   : > { %v382_v28 = vmax.f32 %v374_v25, 0.0  ;;  %v383_v45 = vmax.f32 %v375_v40, 0.0 }
 0x1a8   : > { %v364_v42 = vpop.xlane.xlu1 %363 }
 0x1a9   : > { %v1343_v30 = vmul.f32 %v923_v27, %v382_v28  ;;  %v376_v44 = vadd.f32 %v368_v61, %v364_v42  ;;  %v1356_v48 = vmul.f32 %v924_v46, %v383_v45  ;;  %v525_v42 = vsub.s32 5, %v1308_v13 }
 0x1ab   : > { %441 = vperm.xlu1 %1016, %v1343_v30   ;;  %v384_v47 = vmax.f32 %v376_v44, 0.0 }
 0x1ad   : > { %v1359_v50 = vmul.f32 %v925_v49, %v384_v47  ;;  %v533_v49 = vsub.s32 7, %v1308_v13 }
 0x1af   : > { %438 = vperm.xlu1 %1016, %v1347_v35  }
 0x1b3   : > { %435 = vperm.xlu1 %1016, %v1351_v38  }
 0x1b7   : > { %432 = vperm.xlu1 %1016, %v411_v43  }
 0x1bb   : > { %444 = vperm.xlu1 %1016, %v1356_v48  }
 0x1bf   : > { %447 = vperm.xlu1 %1016, %v1359_v50  }
 0x21a   : > { %v430_v51 = vpop.permute.xlu1 %429 }
 0x21b   : > { %v458_v59 = vrot.slane %v430_v51, %v1364_v56 }
 0x21e   : > { %v427_v55 = vpop.permute.xlu0 %426 }
 0x21f   : > { %v454_v58 = vrot.slane %v427_v55, %v1364_v56 }
 0x221   : > { %v484_v63 = vsel %vm483_vm10, %v458_v59, %v454_v58 }
 0x226   : > { %v442_v52 = vpop.permute.xlu1 %441 }
 0x227   : > { %v474_v16 = vrot.slane %v442_v52, %v1364_v56 }
 0x22a   : > { %v439_v54 = vpop.permute.xlu1 %438 }
 0x22b   : > { %v470_v0 = vrot.slane %v439_v54, %v1364_v56 }
 0x22e   : > { %v436_v57 = vpop.permute.xlu1 %435 }
 0x22f   : > { %v466_v12 = vrot.slane %v436_v57, %v1364_v56 }
 0x232   : > { %v433_v61 = vpop.permute.xlu1 %432 }
 0x233   : > { %v462_v62 = vrot.slane %v433_v61, %v1364_v56 }
 0x235   : > { %v486_v1 = vsel %vm485_vm11, %v462_v62, %v484_v63 }
 0x236   : > { %v488_v3 = vsel %vm487_vm12, %v466_v12, %v486_v1  ;;  %v445_v4 = vpop.permute.xlu1 %444 }
 0x237   : > { %v490_v19 = vsel %vm489_vm13, %v470_v0, %v488_v3  ;;  %v478_v20 = vrot.slane %v445_v4, %v1364_v56 }
 0x238   : > { %v492_v21 = vsel %vm491_vm14, %v474_v16, %v490_v19 }
 0x239   : > { %v494_v24 = vsel %vm493_vm15, %v478_v20, %v492_v21 }
 0x23a   : > { %v448_v22 = vpop.permute.xlu1 %447 }
 0x23b   : > { %v482_v23 = vrot.slane %v448_v22, %v1364_v56 }
 0x23d   : > { %v496_v25 = vsel %vm495_vm1, %v482_v23, %v494_v24 }
 0x23e   : > { %v499_v26 = vsel %vm498_vm2, %v496_v25, -inf }
 0x23f   : > { %500 = vmax.xlane.f32.xlu1 %v499_v26 }
 0x2c8   : > { %v501_v27 = vpop.xlane.xlu1 %500 }
 0x2c9   : > { %v506_v28 = vrot.slane %v501_v27, %v1311_v14  ;;  %v510_v29 = vrot.slane %v501_v27, %v1318_v17  ;;  %v514_v32 = vrot.slane %v501_v27, %v1330_v60  ;;  %v518_v39 = vrot.slane %v501_v27, %v517_v31 }
 0x2ca   : > { %v522_v44 = vrot.slane %v501_v27, %v521_v37  ;;  %v526_v46 = vrot.slane %v501_v27, %v525_v42  ;;  %v534_v54 = vrot.slane %v501_v27, %v533_v49 }
 0x2cb   : > { %v543_v33 = vsub.f32 %v1338_v15, %v506_v28  ;;  %v544_v34 = vsub.f32 %v1335_v18, %v510_v29  ;;  %v545_v40 = vsub.f32 %v411_v43, %v514_v32  ;;  %v546_v45 = vsub.f32 %v1351_v38, %v518_v39 }
 0x2cc   : > { %v529_v18 = vsub.s32 6, %v1308_v13  ;;  %v547_v47 = vsub.f32 %v1347_v35, %v522_v44  ;;  %v548_v52 = vsub.f32 %v1343_v30, %v526_v46  ;;  %v550_v58 = vsub.f32 %v1359_v50, %v534_v54 }
 0x2cd   : > { %v551_v36 = vmul.f32 1.442695, %v543_v33  ;;  %v553_v41 = vmul.f32 1.442695, %v544_v34  ;;  %v555_v15 = vmul.f32 1.442695, %v545_v40 }
 0x2ce   : > { %v557_v43 = vmul.f32 1.442695, %v546_v45  ;;  %v530_v51 = vrot.slane %v501_v27, %v529_v18  ;;  %v559_v38 = vmul.f32 1.442695, %v547_v47  ;;  %v561_v35 = vmul.f32 1.442695, %v548_v52 }
 0x2cf   : > { %1017 = vpow2.f32 %v551_v36  ;;  %v565_v30 = vmul.f32 1.442695, %v550_v58 }
 0x2d0   : > { %1019 = vpow2.f32 %v553_v41  ;;  %v549_v55 = vsub.f32 %v1356_v48, %v530_v51 }
 0x2d1   : > { %1021 = vpow2.f32 %v555_v15 }
 0x2d2   : > { %1023 = vpow2.f32 %v557_v43  ;;  %v563_v59 = vmul.f32 1.442695, %v549_v55 }
 0x2d3   : > { %1025 = vpow2.f32 %v559_v38 }
 0x2d4   : > { %1027 = vpow2.f32 %v561_v35 }
 0x2d5   : > { %1029 = vpow2.f32 %v563_v59 }
 0x2d6   : > { %1031 = vpow2.f32 %v565_v30 }
 0x2dc   : > { %v1018_v53 = vpop.eup %1017 }
 0x2dd   : > { %576 = vperm.xlu0 %1015, %v1018_v53   ;;  %v1020_v57 = vpop.eup %1019 }
 0x2de   : > { %v1022_v61 = vpop.eup %1021 }
 0x2df   : > { %v1024_v62 = vpop.eup %1023 }
 0x2e0   : > { %v1026_v63 = vpop.eup %1025 }
 0x2e1   : > { %579 = vperm.xlu0 %1015, %v1020_v57   ;;  %v1028_v12 = vpop.eup %1027 }
 0x2e2   : > { %v1030_v48 = vpop.eup %1029 }
 0x2e3   : > { %v1032_v0 = vpop.eup %1031 }
 0x2e5   : > { %582 = vperm.xlu0 %1015, %v1022_v61  }
 0x2e9   : > { %585 = vperm.xlu0 %1015, %v1024_v62  }
 0x2ed   : > { %588 = vperm.xlu0 %1015, %v1026_v63  }
 0x2f1   : > { %591 = vperm.xlu0 %1015, %v1028_v12  }
 0x2f5   : > { %594 = vperm.xlu0 %1015, %v1030_v48  }
 0x2f9   : > { %597 = vperm.xlu0 %1015, %v1032_v0  }
 0x358   : > { %v577_v1 = vpop.permute.xlu0 %576 }
 0x359   : > { %v602_v22 = vrot.slane %v577_v1, %v1364_v56 }
 0x35c   : > { %v580_v3 = vpop.permute.xlu0 %579 }
 0x35d   : > { %v606_v20 = vrot.slane %v580_v3, %v1364_v56 }
 0x35f   : > { %v631_v26 = vsel %vm483_vm10, %v606_v20, %v602_v22 }
 0x360   : > { %v583_v50 = vpop.permute.xlu0 %582 }
 0x361   : > { %v610_v21 = vrot.slane %v583_v50, %v1364_v56 }
 0x363   : > { %v632_v28 = vsel %vm485_vm11, %v610_v21, %v631_v26 }
 0x364   : > { %v586_v4 = vpop.permute.xlu0 %585 }
 0x365   : > { %v614_v23 = vrot.slane %v586_v4, %v1364_v56 }
 0x367   : > { %v633_v32 = vsel %vm487_vm12, %v614_v23, %v632_v28 }
 0x368   : > { %v589_v16 = vpop.permute.xlu0 %588 }
 0x369   : > { %v618_v24 = vrot.slane %v589_v16, %v1364_v56 }
 0x36b   : > { %v634_v33 = vsel %vm489_vm13, %v618_v24, %v633_v32 }
 0x36c   : > { %v592_v19 = vpop.permute.xlu0 %591 }
 0x36d   : > { %v622_v27 = vrot.slane %v592_v19, %v1364_v56 }
 0x36f   : > { %v635_v36 = vsel %vm491_vm14, %v622_v27, %v634_v33 }
 0x370   : > { %v595_v25 = vpop.permute.xlu0 %594 }
 0x371   : > { %v626_v29 = vrot.slane %v595_v25, %v1364_v56 }
 0x373   : > { %v636_v40 = vsel %vm493_vm15, %v626_v29, %v635_v36 }
 0x374   : > { %v598_v34 = vpop.permute.xlu0 %597 }
 0x375   : > { %v630_v39 = vrot.slane %v598_v34, %v1364_v56 }
 0x377   : > { %v637_v41 = vsel %vm495_vm1, %v630_v39, %v636_v40 }
 0x378   : > { %v639_v44 = vsel %vm498_vm2, %v637_v41, 0.0 }
 0x379   : > { %640 = vadd.xlane.f32.xlu0 %v639_v44 }
 0x402   : > { %v641_v45 = vpop.xlane.xlu0 %640 }
 0x403   : > { %1033 = vrcp.f32 %v641_v45 }
 0x410   : > { %v1034_v15 = vpop.eup %1033 }
 0x411   : > { %v667_v46 = vrot.slane %v1034_v15, %v525_v42  ;;  %v647_v47 = vrot.slane %v1034_v15, %v1311_v14  ;;  %v651_v52 = vrot.slane %v1034_v15, %v1318_v17  ;;  %v655_v38 = vrot.slane %v1034_v15, %v1330_v60 }
 0x412   : > { %v659_v55 = vrot.slane %v1034_v15, %v517_v31  ;;  %v663_v42 = vrot.slane %v1034_v15, %v521_v37  ;;  %v671_v17 = vrot.slane %v1034_v15, %v529_v18  ;;  %v675_v60 = vrot.slane %v1034_v15, %v533_v49 }
 0x413   : > { %v689_v43 = vmul.f32 %v1028_v12, %v667_v46  ;;  %v684_v51 = vmul.f32 %v1018_v53, %v647_v47  ;;  %v685_v56 = vmul.f32 %v1020_v57, %v651_v52  ;;  %v686_v54 = vmul.f32 %v1022_v61, %v655_v38 }
 0x414   : > { %v687_v35 = vmul.f32 %v1024_v62, %v659_v55  ;;  %v688_v14 = vmul.f32 %v1026_v63, %v663_v42  ;;  %v690_v53 = vmul.f32 %v1030_v48, %v671_v17  ;;  %v691_v57 = vmul.f32 %v1032_v0, %v675_v60 }
 0x415   : > { %719 = vperm.xlu0 %1015, %v689_v43   ;;  %694 = vperm.xlu1 %1016, %v684_v51  }
 0x419   : > { %699 = vperm.xlu1 %1016, %v685_v56  }
 0x41d   : > { %704 = vperm.xlu1 %1016, %v686_v54  }
 0x421   : > { %709 = vperm.xlu1 %1016, %v687_v35  }
 0x425   : > { %714 = vperm.xlu1 %1016, %v688_v14  }
 0x429   : > { %724 = vperm.xlu1 %1016, %v690_v53  }
 0x42d   : > { %729 = vperm.xlu1 %1016, %v691_v57  }
 0x490   : > { %v695_v58 = vpop.permute.xlu1 %694  ;;  %v720_v61 = vpop.permute.xlu0 %719 }
 0x491   : > { %v732_v31 = vmul.f32 %v695_v58, %v1262_v2  ;;  %v737_v18 = vmul.f32 %v720_v61, %v1282_v8 }
 0x493   : > { %v740_v30 = vsel %vm190_vm0, %v732_v31, 0.0  ;;  %v775_v0 = vsel %vm190_vm0, %v737_v18, 0.0 }
 0x494   : > { %v700_v59 = vpop.permute.xlu1 %699  ;;  %v741_v49 = vrot.slane %v740_v30, 4  ;;  %v776_v16 = vrot.slane %v775_v0, 4 }
 0x495   : > { %v733_v37 = vmul.f32 %v700_v59, %v1273_v5 }
 0x496   : > { %v742_v50 = vadd.f32 %v741_v49, %v740_v30  ;;  %v777_v25 = vadd.f32 %v776_v16, %v775_v0 }
 0x497   : > { %v747_v62 = vsel %vm190_vm0, %v733_v37, 0.0 }
 0x498   : > { %v748_v63 = vrot.slane %v747_v62, 4  ;;  %v705_v12 = vpop.permute.xlu1 %704  ;;  %v743_v23 = vrot.slane %v742_v50, 2  ;;  %v778_v40 = vrot.slane %v777_v25, 2 }
 0x499   : > { %v734_v13 = vmul.f32 %v705_v12, %v1276_v6 }
 0x49a   : > { %v749_v2 = vadd.f32 %v748_v63, %v747_v62  ;;  %v744_v34 = vadd.f32 %v743_v23, %v742_v50  ;;  %v779_v38 = vadd.f32 %v778_v40, %v777_v25 }
 0x49b   : > { %v754_v48 = vsel %vm190_vm0, %v734_v13, 0.0 }
 0x49c   : > { %v755_v1 = vrot.slane %v754_v48, 4  ;;  %v710_v3 = vpop.permute.xlu1 %709  ;;  %v750_v8 = vrot.slane %v749_v2, 2  ;;  %v745_v43 = vrot.slane %v744_v34, 1  ;;  %v780_v58 = vrot.slane %v779_v38, 1 }
 0x49d   : > { %v735_v5 = vmul.f32 %v710_v3, %v1292_v10 }
 0x49e   : > { %v756_v4 = vadd.f32 %v755_v1, %v754_v48  ;;  %v751_v27 = vadd.f32 %v750_v8, %v749_v2  ;;  %v746_v17 = vadd.f32 %v745_v43, %v744_v34  ;;  %v781_v12 = vadd.f32 %v780_v58, %v779_v38 }
 0x49f   : > { %v761_v19 = vsel %vm190_vm0, %v735_v5, 0.0 }
 0x4a0   : > { %v762_v20 = vrot.slane %v761_v19, 4  ;;  %v715_v21 = vpop.permute.xlu1 %714  ;;  %v757_v22 = vrot.slane %v756_v4, 2  ;;  %v752_v44 = vrot.slane %v751_v27, 1 }
 0x4a1   : > { %v736_v6 = vmul.f32 %v715_v21, %v1279_v7 }
 0x4a2   : > { %v763_v24 = vadd.f32 %v762_v20, %v761_v19  ;;  %v758_v32 = vadd.f32 %v757_v22, %v756_v4  ;;  %v753_v54 = vadd.f32 %v752_v44, %v751_v27 }
 0x4a3   : > { %v768_v26 = vsel %vm190_vm0, %v736_v6, 0.0 }
 0x4a4   : > { %v764_v28 = vrot.slane %v763_v24, 2  ;;  %v769_v29 = vrot.slane %v768_v26, 4  ;;  %v725_v10 = vpop.permute.xlu1 %724  ;;  %v759_v46 = vrot.slane %v758_v32, 1  ;;  %v804_v31 = vsel %vm483_vm10, %v753_v54, %v746_v17 }
 0x4a5   : > { %v738_v33 = vmul.f32 %v725_v10, %v1287_v9 }
 0x4a6   : > { %v765_v36 = vadd.f32 %v764_v28, %v763_v24  ;;  %v770_v39 = vadd.f32 %v769_v29, %v768_v26  ;;  %v760_v14 = vadd.f32 %v759_v46, %v758_v32 }
 0x4a7   : > { %v782_v41 = vsel %vm190_vm0, %v738_v33, 0.0 }
 0x4a8   : > { %v771_v7 = vrot.slane %v770_v39, 2  ;;  %v783_v45 = vrot.slane %v782_v41, 4  ;;  %v730_v15 = vpop.permute.xlu1 %729  ;;  %v766_v51 = vrot.slane %v765_v36, 1  ;;  %v805_v37 = vsel %vm485_vm11, %v760_v14, %v804_v31 }
 0x4a9   : > { %v739_v47 = vmul.f32 %v730_v15, %v1301_v11 }
 0x4aa   : > { %v772_v52 = vadd.f32 %v771_v7, %v770_v39  ;;  %v784_v56 = vadd.f32 %v783_v45, %v782_v41  ;;  %v767_v53 = vadd.f32 %v766_v51, %v765_v36 }
 0x4ab   : > { %v789_v9 = vsel %vm190_vm0, %v739_v47, 0.0 }
 0x4ac   : > { %v773_v55 = vrot.slane %v772_v52, 1  ;;  %v785_v35 = vrot.slane %v784_v56, 2  ;;  %v790_v42 = vrot.slane %v789_v9, 4  ;;  %v806_v30 = vsel %vm487_vm12, %v767_v53, %v805_v37 }
 0x4ae   : > { %v786_v60 = vadd.f32 %v785_v35, %v784_v56  ;;  %v791_v57 = vadd.f32 %v790_v42, %v789_v9  ;;  %v774_v11 = vadd.f32 %v773_v55, %v772_v52 }
 0x4b0   : > { %v787_v59 = vrot.slane %v786_v60, 1  ;;  %v792_v61 = vrot.slane %v791_v57, 2  ;;  %v807_v18 = vsel %vm489_vm13, %v774_v11, %v806_v30 }
 0x4b1   : > { %v808_v48 = vsel %vm491_vm14, %v781_v12, %v807_v18 }
 0x4b2   : > { %v793_v62 = vadd.f32 %v792_v61, %v791_v57  ;;  %v788_v63 = vadd.f32 %v787_v59, %v786_v60 }
 0x4b4   : > { %v794_v13 = vrot.slane %v793_v62, 1  ;;  %v809_v0 = vsel %vm493_vm15, %v788_v63, %v808_v48 }
 0x4b6   : > { %v795_v49 = vadd.f32 %v794_v13, %v793_v62 }
 0x4b8   : > { %v810_v2 = vsel %vm495_vm1, %v795_v49, %v809_v0 }
 0x4b9   : > { %812 = vst.msk [vmem:[%s167_s27] sm:$0xff] %vm190_vm0, %v810_v2 }
 0x4ba   : > { %1074 = shalt.err (!%p1071_p12)
}
 0x4bb   : > { %s1075_s6 = scalar_lea.hbm %s1463_s7, 128  ;;  %s1079_s19 = scalar_lea.hbm %s1503_s2, 384 }
 0x4bc   : > { %p1076_p0 = scmp.ne.s32.totalorder %s1463_s7, %s1075_s6  ;;  %p1080_p2 = scmp.lt.s32.totalorder %s1463_s7, %s1503_s2 }
 0x4bd   : > { %p1081_p4 = scmp.lt.s32.totalorder %s1079_s19, %s1075_s6 }
 0x4be   : > { %p1077_p1 = pnand %p1076_p0, %p1192_p9 }
 0x4bf   : > { %p1082_p5 = por %p1081_p4, %p1080_p2 }
 0x4c0   : > { %p1078_p3 = pneg %p1077_p1 }
 0x4c2   : > { %p1083_p6 = pnand %p1082_p5, %p1078_p3 }
 0x4c4   : > { %1086 = shalt.err (!%p1083_p6)
}
 0x4c5   : > { %972 = dma.vmem_to_hbm [thread:$0]  (%p1192_p9), %s828_s29, 128, %s1463_s7, %s814_s8  }
 0x4c6 PF: > { %p978_p10 = scmp.ge.s32.totalorder %s1125_s12, 2  ;;  %s839_s22 = sand.u32 1, %s1113_s9  }
 0x4c7   : > { %p1507_p13 = scmp.ne.s32.totalorder %s1506_s21, 0  ;;  %s840_s23 = scalar_lea.sflag [#allocation4], %s839_s22 }
 0x4c9   : > { %p975_p7 = pnand %p978_p10, %p1507_p13 }
 0x4cb   : > { %p976_p8 = pneg %p975_p7 }
 0x4cd   : > { %1108 = dma.done.wait (%p976_p8), %s840_s23, 128  }
 0x4ce   : > { %1110 = vsyncadd (%p976_p8), %s840_s23, 4294967168  ;;  %p15_p11 = scmp.ge.s32.totalorder %s1173_s15, 5   ;;  %s1508_s9 = smov %s1117_s10 }
 0x4cf   : > { %s1509_s10 = smov %s1121_s11  ;;  %s1510_s11 = smov %s1185_s18 }
 0x4d0   : > { %s1511_s12 = smov %s1173_s15  ;;  %17 = sbr.rel (!%p15_p11) target bundleno = 5 (0x5), region = 73 }
 0x4d5   :  { %845 = vsyncpa [#allocation3], 1 }
 0x4d6   :  { %847 = vsyncpa [#allocation3 + $0x1], 1 }
 0x4d7   :  { %848 = vsyncpa [#allocation4], 1 }
 0x4d8   :  { %850 = vsyncpa [#allocation4 + $0x1], 1 }

</bundles_post_ra>
